<compile_context>
chip_gen: v7x
topology: tpu7x:2x2x1
jax: 0.10.0
libtpu: 0.0.40
codegen_flags: <defaults>
</compile_context>

<pallas_src>
import functools

import jax
import jax.numpy as jnp
from jax.experimental import pallas as pl
from jax.experimental.pallas import tpu as pltpu


def _round_up(a, m):
    return -(-a // m) * m


def _tiled_bytes(h, w, itemsize):
    """VMEM bytes of an (h, w) slab after TPU (sublane, 128)-lane tiling (dtype-aware)."""
    sub = max(8, 32 // itemsize)          # f32 -> 8 sublanes, bf16 -> 16, int8/fp8 -> 32
    return _round_up(h, sub) * _round_up(w, 128) * itemsize


def _vmem_budget():
    """Return (vmem_limit_bytes, per-pipeline-stage byte budget), generation-aware."""
    try:
        phys = int(pltpu.get_tpu_info().vmem_capacity_bytes)
    except Exception:
        phys = 64 * 1024 * 1024           # conservative fallback (v7x per-core VMEM)
    limit = min((phys * 3) // 4, 64 * 1024 * 1024)  # 64 MiB on v5e/v6e, 48 MiB on v7x
    budget = limit // 3                   # in+out double-buffered -> keep ~1/3 headroom
    return limit, budget


def _bn_pad_kernel(ss_ref, x_ref, o_ref, *, pad_pixels):
    """out = zero-pad(x * scale) + shift, written with one full-block, offset-0 store."""
    p = pad_pixels
    blk, H, W = x_ref.shape

    ss = ss_ref[...]                      # (blk, 1, 2) f32, packed [scale | shift]
    s = ss[:, :, 0:1]                     # (blk, 1, 1)
    b = ss[:, :, 1:2]                     # (blk, 1, 1)  == BN shift == border pad value

    y = x_ref[...].astype(jnp.float32) * s              # (blk, H, W)   VPU
    # In-register zero pad of the scaled interior (single aligned store afterwards).
    zc = jnp.zeros((blk, H, p), jnp.float32)
    y = jnp.concatenate([zc, y, zc], axis=2)             # (blk, H,      W + 2p)
    zr = jnp.zeros((blk, p, W + 2 * p), jnp.float32)
    y = jnp.concatenate([zr, y, zr], axis=1)             # (blk, H + 2p, W + 2p)

    o_ref[...] = (y + b).astype(o_ref.dtype)


def _bn_kernel(ss_ref, x_ref, o_ref):
    """pad_pixels == 0: plain affine BN on lane-dense (blk, H*W) planes."""
    ss = ss_ref[...]                      # (blk, 2) f32
    s = ss[:, 0:1]
    b = ss[:, 1:2]
    o_ref[...] = (x_ref[...].astype(jnp.float32) * s + b).astype(o_ref.dtype)


def bn_and_pad(x, weight, bias, running_mean, running_var, *, eps=1e-5,
               pad_pixels=1, affine=True, block_planes=None):
    N, C, H, W = x.shape
    p = int(pad_pixels)
    NC = N * C
    itemsize = x.dtype.itemsize

    inv_std = 1.0 / jnp.sqrt(running_var.astype(jnp.float32) + eps)
    if affine:
        scale = weight.astype(jnp.float32) * inv_std
        shift = bias.astype(jnp.float32) - running_mean.astype(jnp.float32) * scale
    else:
        scale = inv_std
        shift = -running_mean.astype(jnp.float32) * inv_std
    # Border pad value equals `shift` in both branches -> no third per-channel input.

    # Packed per-plane [scale, shift]: one VMEM block instead of two (halves footprint).
    ss = jnp.broadcast_to(jnp.stack([scale, shift], axis=-1)[None], (N, C, 2))
    ss = ss.reshape(NC, 2)

    vmem_limit, budget = _vmem_budget()
    min_steps = 8                         # keep the pipeline (and v7x's 2 TCs) fed

    if p == 0:
        # Lane-dense path: lane dim = H*W, all loads/stores are full-lane.
        L = H * W
        xf = x.reshape(NC, L)
        per_plane = 2 * _round_up(L, 128) * itemsize + 512
        blk = max(1, min(budget // per_plane, 1024,
                         max(min_steps, pl.cdiv(NC, min_steps))))
        if block_planes is not None:
            blk = max(1, min(NC, int(block_planes)))
        # Sublane-dim legality: multiple of 8 or the full extent.
        if blk >= NC:
            blk = NC
        else:
            blk = min(NC, max(8, (blk // 8) * 8))
        grid = (pl.cdiv(NC, blk),)

        out_flat = pl.pallas_call(
            _bn_kernel,
            out_shape=jax.ShapeDtypeStruct((NC, L), x.dtype),
            grid=grid,
            in_specs=[
                pl.BlockSpec((blk, 2), lambda i: (i, 0)),     # packed scale|shift
                pl.BlockSpec((blk, L), lambda i: (i, 0)),     # flattened planes
            ],
            out_specs=pl.BlockSpec((blk, L), lambda i: (i, 0)),
            compiler_params=pltpu.CompilerParams(
                dimension_semantics=("parallel",),
                vmem_limit_bytes=vmem_limit,
            ),
        )(ss, xf)
        return out_flat.reshape(N, C, H, W)

    # p > 0 path: keep (plane, H, W) blocks, one fused padded store per block.
    Ho, Wo = H + 2 * p, W + 2 * p
    xf = x.reshape(NC, H, W)
    per_plane = (_tiled_bytes(H, W, itemsize)
                 + _tiled_bytes(Ho, Wo, itemsize)
                 + _tiled_bytes(1, 2, 4))
    blk = max(1, min(budget // per_plane, 1024, max(1, pl.cdiv(NC, min_steps))))
    if block_planes is not None:
        blk = max(1, min(NC, int(block_planes)))
    grid = (pl.cdiv(NC, blk),)

    out_flat = pl.pallas_call(
        functools.partial(_bn_pad_kernel, pad_pixels=p),
        out_shape=jax.ShapeDtypeStruct((NC, Ho, Wo), x.dtype),
        grid=grid,
        in_specs=[
            pl.BlockSpec((blk, 1, 2), lambda i: (i, 0, 0)),   # packed scale|shift
            pl.BlockSpec((blk, H, W), lambda i: (i, 0, 0)),   # input planes
        ],
        out_specs=pl.BlockSpec((blk, Ho, Wo), lambda i: (i, 0, 0)),
        compiler_params=pltpu.CompilerParams(
            dimension_semantics=("parallel",),
            vmem_limit_bytes=vmem_limit,
        ),
    )(ss.reshape(NC, 1, 2), xf)

    # Free reshape: split the leading (N*C) axis back into (N, C).
    return out_flat.reshape(N, C, Ho, Wo)


def _reference(x, weight, bias, running_mean, running_var, *, eps, pad_pixels):
    inv_std = 1.0 / jnp.sqrt(running_var + eps)
    y = (x - running_mean[None, :, None, None]) * inv_std[None, :, None, None]
    y = y * weight[None, :, None, None] + bias[None, :, None, None]
    p = pad_pixels
    if p == 0:
        return y
    pad_values = bias - running_mean * weight * inv_std
    out = jnp.pad(y, ((0, 0), (0, 0), (p, p), (p, p)))
    pv = pad_values[None, :, None, None]
    out = out.at[:, :, 0:p, :].set(pv)
    out = out.at[:, :, -p:, :].set(pv)
    out = out.at[:, :, :, 0:p].set(pv)
    out = out.at[:, :, :, -p:].set(pv)
    return out


def _make_inputs(key, N, C, H, W):
    k_x, k_w, k_b, k_m, k_v = jax.random.split(key, 5)
    x = jax.random.normal(k_x, (N, C, H, W), dtype=jnp.float32)
    weight = jax.random.normal(k_w, (C,), dtype=jnp.float32) * 0.5 + 1.0
    bias = jax.random.normal(k_b, (C,), dtype=jnp.float32) * 0.1
    running_mean = jax.random.normal(k_m, (C,), dtype=jnp.float32) * 0.2
    running_var = jax.random.uniform(k_v, (C,), dtype=jnp.float32,
                                     minval=0.5, maxval=1.5)
    return x, weight, bias, running_mean, running_var


if __name__ == "__main__":
    eps = 1e-5
    key = jax.random.PRNGKey(0)
    k1, k2 = jax.random.split(key, 2)

    # Test 1: main case (pad=1), multi-plane blocks.
    N, C, H, W = 2, 4, 16, 16
    pad = 1
    x, w, b, m, v = _make_inputs(k1, N, C, H, W)
    out = jax.block_until_ready(bn_and_pad(x, w, b, m, v, eps=eps, pad_pixels=pad))
    ref = _reference(x, w, b, m, v, eps=eps, pad_pixels=pad)
    assert out.shape == (N, C, H + 2 * pad, W + 2 * pad)
    assert jnp.allclose(out, ref, atol=1e-5, rtol=1e-5), "mismatch (test 1)"

    # Test 2: pad=2, N*C not divisible by the plane block (partial last block).
    N, C, H, W = 2, 3, 8, 8
    pad = 2
    x, w, b, m, v = _make_inputs(k2, N, C, H, W)
    out = jax.block_until_ready(
        bn_and_pad(x, w, b, m, v, eps=eps, pad_pixels=pad, block_planes=4))
    ref = _reference(x, w, b, m, v, eps=eps, pad_pixels=pad)
    assert out.shape == (N, C, H + 2 * pad, W + 2 * pad)
    assert jnp.allclose(out, ref, atol=1e-5, rtol=1e-5), "mismatch (test 2)"

    # Test 3: pad_pixels = 0 (pure BN, lane-dense flattened path).
    N, C, H, W = 2, 4, 16, 16
    x, w, b, m, v = _make_inputs(k1, N, C, H, W)
    out = jax.block_until_ready(bn_and_pad(x, w, b, m, v, eps=eps, pad_pixels=0))
    ref = _reference(x, w, b, m, v, eps=eps, pad_pixels=0)
    assert out.shape == (N, C, H, W)
    assert jnp.allclose(out, ref, atol=1e-5, rtol=1e-5), "mismatch (test 3)"

    print("KERNEL_OK")
</pallas_src>

<mosaic_0001>
module attributes {stable_mosaic.version = 11 : i64} {
  func.func @_bn_pad_kernel(%arg0: i32, %arg1: memref<1x1x2xf32, #tpu.memory_space<vmem>>, %arg2: memref<1x16x16xf32, #tpu.memory_space<vmem>>, %arg3: memref<1x18x18xf32, #tpu.memory_space<vmem>>) attributes {dimension_semantics = [#tpu.dimension_semantics<parallel>], iteration_bounds = array<i64: 8>, scalar_prefetch = 0 : i64, scratch_operands = 0 : i64, tpu.core_type = #tpu.core_type<tc>, window_params = [{transform_indices = @transform_0, window_bounds = array<i64: 1, 1, 2>}, {transform_indices = @transform_1, window_bounds = array<i64: 1, 16, 16>}, {transform_indices = @transform_2, window_bounds = array<i64: 1, 18, 18>}]} {
    %c0 = arith.constant 0 : index
    %c0_0 = arith.constant 0 : index
    %c0_1 = arith.constant 0 : index
    %0 = vector.load %arg1[%c0, %c0_0, %c0_1] : memref<1x1x2xf32, #tpu.memory_space<vmem>>, vector<1x1x2xf32>
    %1 = vector.extract_strided_slice %0 {offsets = [0, 0, 0], sizes = [1, 1, 1], strides = [1, 1, 1]} : vector<1x1x2xf32> to vector<1x1x1xf32>
    %2 = vector.extract_strided_slice %0 {offsets = [0, 0, 1], sizes = [1, 1, 1], strides = [1, 1, 1]} : vector<1x1x2xf32> to vector<1x1x1xf32>
    %c0_2 = arith.constant 0 : index
    %c0_3 = arith.constant 0 : index
    %c0_4 = arith.constant 0 : index
    %3 = vector.load %arg2[%c0_2, %c0_3, %c0_4] : memref<1x16x16xf32, #tpu.memory_space<vmem>>, vector<1x16x16xf32>
    %4 = vector.broadcast %1 : vector<1x1x1xf32> to vector<1x16x16xf32>
    %5 = arith.mulf %3, %4 : vector<1x16x16xf32>
    %cst = arith.constant 0.000000e+00 : f32
    %6 = vector.broadcast %cst : f32 to vector<1x16x1xf32>
    %7 = tpu.concatenate %6, %5, %6 in 2 : vector<1x16x1xf32>, vector<1x16x16xf32>, vector<1x16x1xf32> -> vector<1x16x18xf32>
    %cst_5 = arith.constant 0.000000e+00 : f32
    %8 = vector.broadcast %cst_5 : f32 to vector<1x1x18xf32>
    %9 = tpu.concatenate %8, %7, %8 in 1 : vector<1x1x18xf32>, vector<1x16x18xf32>, vector<1x1x18xf32> -> vector<1x18x18xf32>
    %10 = vector.broadcast %2 : vector<1x1x1xf32> to vector<1x18x18xf32>
    %11 = arith.addf %9, %10 : vector<1x18x18xf32>
    %c0_6 = arith.constant 0 : index
    %c0_7 = arith.constant 0 : index
    %c0_8 = arith.constant 0 : index
    %12 = vector.load %arg3[%c0_6, %c0_7, %c0_8] : memref<1x18x18xf32, #tpu.memory_space<vmem>>, vector<1x18x18xf32>
    tpu.vector_store %arg3[%c0_6, %c0_7, %c0_8], %11 {strides = array<i32>} : memref<1x18x18xf32, #tpu.memory_space<vmem>>, vector<1x18x18xf32>,
    return
  }
  func.func @transform_0(%arg0: i32) -> (i32, i32, i32) {
    %c0_i32 = arith.constant 0 : i32
    %c0_i32_0 = arith.constant 0 : i32
    %c0_i32_1 = arith.constant 0 : i32
    return %arg0, %c0_i32, %c0_i32_0 : i32, i32, i32
  }
  func.func @transform_1(%arg0: i32) -> (i32, i32, i32) {
    %c0_i32 = arith.constant 0 : i32
    %c0_i32_0 = arith.constant 0 : i32
    %c0_i32_1 = arith.constant 0 : i32
    return %arg0, %c0_i32, %c0_i32_0 : i32, i32, i32
  }
  func.func @transform_2(%arg0: i32) -> (i32, i32, i32) {
    %c0_i32 = arith.constant 0 : i32
    %c0_i32_0 = arith.constant 0 : i32
    %c0_i32_1 = arith.constant 0 : i32
    return %arg0, %c0_i32, %c0_i32_0 : i32, i32, i32
  }
}

</mosaic_0001>

<bundles_post_ra>
// kernel: tpu_custom_call.1
= control target key start
LH: loop header
LB: loop body
LE: loop exit
PB: predicated region body
PF: predicated region fallthrough
CT: control target
= control target key end

     0   :  { %7 = vsyncpa [#allocation3], 0  ;;  %s563_s0 = inlined_call_operand.vmem [shape: f32[8,1,2], index: 0, kind: input, shape index: {}]   ;;  %s564_s1 = inlined_call_operand.hbm [shape: f32[8,16,16], index: 1, kind: input, shape index: {}]   ;;  %s565_s2 = inlined_call_operand.vmem [shape: f32[8,18,18], index: 2, kind: output, shape index: {}]  }
   0x1   :  { %9 = vsyncpa [#allocation3 + $0x1], 0  ;;  %s452_s9 = smov 0   ;;  %s454_s10 = smov 0  }
   0x2   :  { %s456_s11 = smov 0   ;;  %s458_s12 = smov 0  }
   0x3 LB: > { %s471_s13 = sadd.s32 4294967295, %s429_s12   ;;  %s474_s14 = sadd.s32 1, %s429_s12   ;;  %s429_s12 = sphi %s458_s12, %s572_s12   ;;  %s425_s11 = sphi %s456_s11, %s571_s11   ;;  %s421_s10 = sphi %s454_s10, %s570_s10   ;;  %s417_s9 = sphi %s452_s9, %s569_s9  }
   0x4   : > { %s45_s15 = ssub.s32 %s429_s12, %s474_s14  ;;  %s48_s16 = sadd.s32 1, %s425_s11 }
   0x5   : > { %p46_p0 = scmp.eq.s32.totalorder %s45_s15, 0  ;;  %p55_p1 = scmp.ne.s32.totalorder %s425_s11, %s421_s10 }
   0x6   : > { %p56_p2 = scmp.eq.s32.totalorder %s429_s12, 0  ;;  %p61_p3 = scmp.ne.s32.totalorder %s421_s10, %s417_s9 }
   0x7   : > { %s484_s17 = scalar_select %p46_p0, %s425_s11, %s48_s16  }
   0x8   : > { %p57_p4 = por %p56_p2, %p55_p1  ;;  %p62_p5 = scmp.eq.s32.totalorder %s471_s13, 0 }
   0x9   : > { %p325_p6 = scmp.lt.s32.totalorder %s429_s12, 8  ;;  %s117_s19 = sand.u32 1, %s425_s11  }
   0xa   : > { %p488_p7 = por %p62_p5, %p61_p3  ;;  %s308_s20 = sshll.u32 %s117_s19, 4 }
   0xb   : > { %s317_s21 = sshll.u32 %s429_s12, 8  ;;  %s121_s25 = scalar_lea.vmem [#allocation2], %s308_s20 }
   0xc   : > { %s497_s24 = scalar_lea.hbm %s564_s1, %s317_s21  ;;  %s128_s26 = sshll.u32 %s121_s25, 4  ;;  %s499_s26 = int_to_ptr.vmem [resolvable:$true] %s128_s26 }
   0xd   : > { %p501_p8 = pnand %p325_p6, %p57_p4  ;;  %s506_s28 = scalar_lea.sflag [#allocation3], %s117_s19 }
   0xe   : > { %s365_s29 = scalar_lea.hbm %s497_s24, 256  ;;  %s370_s4 = scalar_lea.hbm %s564_s1, 2048 }
   0xf   : > { %p366_p10 = scmp.ne.s32.totalorder %s497_s24, %s365_s29  ;;  %p367_p11 = pneg %p501_p8 }
  0x10   : > { %p371_p0 = scmp.lt.u32.totalorder %s497_s24, %s564_s1  ;;  %p372_p1 = scmp.lt.u32.totalorder %s370_s4, %s365_s29 }
  0x11   : > { %p368_p12 = pnand %p367_p11, %p366_p10  ;;  %p374_p3 = scmp.lt.u32.totalorder %s365_s29, %s497_s24 }
  0x12   : > { %p373_p2 = por %p372_p1, %p371_p0 }
  0x13   : > { %p369_p13 = pneg %p368_p12 }
  0x14   : > { %p375_p4 = por %p374_p3, %p373_p2 }
  0x16   : > { %p376_p5 = pnand %p375_p4, %p369_p13 }
  0x18   : > { %379 = shalt.err (!%p376_p5)
}
  0x19   : > { %s380_s7 = scalar_lea.vmem %s499_s26, 256  ;;  %s431_s8 = smov [#allocation2]  }
  0x1a   : > { %p381_p6 = scmp.ne.s32.totalorder %s499_s26, %s380_s7  ;;  %s385_s9 = sshll.u32 %s431_s8, 4  ;;  %s386_s9 = int_to_ptr.vmem [resolvable:$false] %s385_s9 }
  0x1b   : > { %s387_s15 = scalar_lea.vmem %s386_s9, 512  ;;  %p388_p9 = scmp.lt.s32.totalorder %s499_s26, %s386_s9 }
  0x1c   : > { %p383_p10 = pnand %p381_p6, %p367_p11  ;;  %p389_p0 = scmp.lt.s32.totalorder %s387_s15, %s380_s7 }
  0x1e   : > { %p384_p12 = pneg %p383_p10  ;;  %p390_p1 = por %p389_p0, %p388_p9 }
  0x20   : > { %p391_p2 = pnand %p390_p1, %p384_p12 }
  0x22   : > { %394 = shalt.err (!%p391_p2)
}
  0x23   : > { %s432_s16 = smov 128   ;;  %s433_s19 = smov 8  }
  0x24   : > { %324 = dma.hbm_to_vmem [thread:$0]  (!%p501_p8), %s497_s24, 256, %s499_s26, %s506_s28, %s432_s16, %s432_s16, %s433_s19  }
  0x25   : > { %p136_p11 = scmp.lt.s32.totalorder %s429_s12, 9  ;;  %p568_p13 = scmp.ge.s32.totalorder %s429_s12, 1 }
  0x27   : > { %p137_p3 = pnand %p568_p13, %p136_p11 }
  0x28   : > { %s142_s20 = sand.u32 (!%p137_p3), 1, %s421_s10  }
  0x29   : > { %140 = sbr.rel (%p137_p3) target bundleno = 312 (0x138), region = 28  ;;  %s312_s21 = sshll.u32 (!%p137_p3), %s142_s20, 4 }
  0x2a   : > { %s143_s22 = scalar_lea.sflag (!%p137_p3), [#allocation3], %s142_s20  ;;  %s146_s23 = scalar_lea.vmem (!%p137_p3), [#allocation2], %s312_s21 }
  0x30   : > { %412 = dma.done.wait (%p488_p7), %s143_s22, 256  }
  0x31   : > { %414 = vsyncadd (%p488_p7), %s143_s22, 4294967040  ;;  %p170_p9 = scmp.lt.s32.totalorder %s471_s13, 7  ;;  %v434_v0 = vmov 0   ;;  %v435_v2 = vmov 1   ;;  %v179_v3 = vld [vmem:[%s146_s23] sm:$0xff]  ;;  %v180_v6 = vld [vmem:[%s146_s23 + $0x8] sm:$0xff] }
  0x32   : > { %363 = vset.pattern.permute.xlu0 %v434_v0  ;;  %s436_s18 = smov 1   ;;  %vm200_vm0 = vcmask 7168   ;;  %vm203_vm1 = vcmask 138240   ;;  %vm208_vm2 = vcmask 1040384   ;;  %vm224_vm3 = vcmask 146432  }
  0x33   : > { %s574_s13 = smov (!%p170_p9, %s471_s13), 7  ;;  %vm227_vm4 = vcmask 140288  }
  0x34   : > { %s172_s25 = scalar_lea.vmem %s563_s0, %s574_s13  ;;  %s318_s26 = smul.u32 24, %s574_s13 }
  0x35   : > { %v314_v1 = vld [vmem:[%s172_s25] ss:$0 sm:$0xff] }
  0x36   : > { %187 = vperm.xlu0 %363, %v314_v1   ;;  %s177_s29 = scalar_lea.vmem %s565_s2, %s318_s26 }
  0x3a   : > { %364 = vset.pattern.permute.xlu0 %v435_v2 }
  0x3b   : > { %218 = vperm.xlu0 %364, %v314_v1  }
  0xb5   : > { %v188_v4 = vpop.permute.xlu0 %187 }
  0xb6   : > { %v190_v5 = vmul.f32 %v188_v4, %v179_v3  ;;  %v191_v7 = vmul.f32 %v188_v4, %v180_v6 }
  0xb8   : > { %194 = vrot.lane.b32.xlu1 %v190_v5, %s436_s18 }
  0xba   : > { %v219_v12 = vpop.permute.xlu0 %218 }
  0xbc   : > { %196 = vrot.lane.b32.xlu1 %v191_v7, %s436_s18 }
 0x12a   : > { %v195_v8 = vpop.permute.xlu1 %194 }
 0x12b   : > { %v201_v9 = vsel %vm200_vm0, 0.0, %v195_v8 }
 0x12c   : > { %v204_v10 = vsel %vm203_vm1, %v201_v9, 0.0 }
 0x12d   : > { %v209_v11 = vrot.slane %v204_v10, 7 }
 0x12e   : > { %v197_v13 = vpop.permute.xlu1 %196 }
 0x12f   : > { %v202_v14 = vsel %vm200_vm0, 0.0, %v197_v13  ;;  %v215_v15 = vsel %vm208_vm2, 0.0, %v209_v11 }
 0x130   : > { %v205_v16 = vsel %vm203_vm1, %v202_v14, 0.0  ;;  %v221_v17 = vadd.f32 %v219_v12, %v215_v15 }
 0x131   : > { %v210_v18 = vrot.slane %v205_v16, 7 }
 0x132   : > { %225 = vst.msk [vmem:[%s177_s29] sm:$0xff] %vm224_vm3, %v221_v17 }
 0x133   : > { %v211_v19 = vsel %vm208_vm2, %v209_v11, %v210_v18  ;;  %v216_v20 = vsel %vm208_vm2, %v210_v18, 0.0 }
 0x134   : > { %v222_v21 = vadd.f32 %v219_v12, %v211_v19  ;;  %v223_v22 = vadd.f32 %v219_v12, %v216_v20 }
 0x136   : > { %226 = vst.msk [vmem:[%s177_s29 + $0x8] sm:$0xff] %vm224_vm3, %v222_v21 }
 0x137   : > { %228 = vst.msk [vmem:[%s177_s29 + $0x10] sm:$0x3] %vm227_vm4, %v223_v22 }
 0x138 PF: > { %p12_p7 = scmp.ge.s32.totalorder %s474_s14, 10   ;;  %s569_s9 = smov %s421_s10 }
 0x139   : > { %s570_s10 = smov %s425_s11  ;;  %s571_s11 = smov %s484_s17 }
 0x13a   : > { %s572_s12 = smov %s474_s14  ;;  %14 = sbr.rel (!%p12_p7) target bundleno = 3 (0x3), region = 71 }
 0x141   :  { %250 = vsyncpa [#allocation3], 1 }
 0x142   :  { %252 = vsyncpa [#allocation3 + $0x1], 1 }

</bundles_post_ra>
